<compile_context>
chip_gen: v6e
topology: v6e:2x2x1
jax: 0.10.0
libtpu: 0.0.40
codegen_flags: <defaults>
</compile_context>

<pallas_src>
import jax
import jax.numpy as jnp
from jax.experimental import pallas as pl
from jax.experimental.pallas import tpu as pltpu

# ----- small, module-consistent configuration (scaled down from the original) -----
BATCH_SIZE = 2          # original: 12
MANY_TOKENS = 3         # original: 5
VOCAB = 512             # original: 49408  (multiple of 128 for the lane axis)
TOTAL_LEN = 16          # original: 248
START_TOK = VOCAB - 2   # original: 49406
END_TOK = VOCAB - 1     # original: 49407
TAU = 1000.0            # self.much_hard (only rescales logits; argmax-invariant)

# original script filters the prompt: drop 0, start and end tokens
_raw_prompt = [0, 7, START_TOK, 42, END_TOK]
PROMPT = [t for t in _raw_prompt if t != 0 and t != START_TOK and t != END_TOK]
PAD_LEN = TOTAL_LEN - (MANY_TOKENS + len(PROMPT) + 1)
SOFT_START = 1 + len(PROMPT)          # first learned (gumbel) row in the sequence

# tiling (toy sizes chosen to exercise both the V-reduction and row-tiled paths)
V_TILE = 256            # vocab tile for the argmax reduction (production: ~2048-4096)
ROW_TILE = 8            # sequence rows per emission block (production: 8-16 on v7x)
VMEM_LIMIT = 32 * 1024 * 1024   # raise for bigger production tiles (<=~48 MiB on v7x)


# --------------------------- phase 1: argmax / target table ---------------------------
def _argmax_target_kernel(tid_ref, normu_ref, gumbel_ref, tgt_ref, val_sc, idx_sc):
    """Running elementwise argmax over V tiles; final table written on the last tile.

    tid_ref    : (1, TOTAL_LEN, 1) int32 — fixed token id per row, -1 on learned rows.
    normu_ref  : (B, MANY_TOKENS, V_TILE) learned logits tile.
    gumbel_ref : (B, MANY_TOKENS, V_TILE) gumbel noise tile.
    tgt_ref    : (B, TOTAL_LEN, 1) int32 output target-id table (written at k == last).
    val_sc     : (B, MANY_TOKENS, V_TILE) f32 running per-lane-slot max.
    idx_sc     : (B, MANY_TOKENS, V_TILE) i32 running per-lane-slot global index.
    """
    k = pl.program_id(0)
    B, MT, VT = normu_ref.shape

    y = normu_ref[...].astype(jnp.float32) + gumbel_ref[...].astype(jnp.float32)
    lane = jax.lax.broadcasted_iota(jnp.int32, (1, 1, VT), 2)
    gidx = lane + k * VT                                   # global vocab index per slot

    @pl.when(k == 0)
    def _():
        val_sc[...] = jnp.full(val_sc.shape, -jnp.inf, val_sc.dtype)
        idx_sc[...] = jnp.zeros(idx_sc.shape, idx_sc.dtype)

    # elementwise running compare-and-select (VPU only, no per-tile XLU reductions);
    # strict '>' keeps first-occurrence tie-breaking across tiles.
    better = y > val_sc[...]
    val_sc[...] = jnp.where(better, y, val_sc[...])
    idx_sc[...] = jnp.where(better, gidx, idx_sc[...])

    @pl.when(k == pl.num_programs(0) - 1)
    def _():
        v = val_sc[...]
        vmax = jnp.max(v, axis=-1, keepdims=True)                       # (B, MT, 1)
        # first maximal global index == torch/jnp argmax tie-breaking
        first = jnp.min(jnp.where(v == vmax, idx_sc[...], VOCAB),
                        axis=-1, keepdims=True)                         # (B, MT, 1)

        T = tgt_ref.shape[1]
        target = jnp.broadcast_to(tid_ref[...], (B, T, 1))              # fixed rows
        seq = jax.lax.broadcasted_iota(jnp.int32, (1, T, 1), 1)
        for j in range(MANY_TOKENS):                                    # tiny select chain
            target = jnp.where(seq == SOFT_START + j, first[:, j:j + 1, :], target)
        tgt_ref[...] = target


# --------------------------- phase 2: one-hot emission ---------------------------
def _emit_onehot_kernel(tgt_ref, out_ref):
    """Pure store stream: one (1,1,V) lane iota, one compare, one full-block store.

    tgt_ref : (1, ROW_TILE, 1) int32 target ids for this tile.
    out_ref : (1, ROW_TILE, V) float32 output block (lane-dense, V % 128 == 0).
    """
    _, R, V = out_ref.shape
    lane = jax.lax.broadcasted_iota(jnp.int32, (1, 1, V), 2)
    out_ref[...] = (lane == tgt_ref[...]).astype(out_ref.dtype)


@jax.jit
def pars_forward(token_ids, normu, gumbel):
    B, MT, V = normu.shape
    n_vtiles = pl.cdiv(V, V_TILE)
    n_rtiles = pl.cdiv(TOTAL_LEN, ROW_TILE)

    # Phase 1: (B, TOTAL_LEN, 1) int32 target-id table (tiny; ~12 KB at production).
    target_tbl = pl.pallas_call(
        _argmax_target_kernel,
        out_shape=jax.ShapeDtypeStruct((B, TOTAL_LEN, 1), jnp.int32),
        grid_spec=pltpu.PrefetchScalarGridSpec(
            num_scalar_prefetch=0,
            grid=(n_vtiles,),
            in_specs=[
                pl.BlockSpec((1, TOTAL_LEN, 1), lambda k: (0, 0, 0)),
                pl.BlockSpec((B, MT, V_TILE), lambda k: (0, 0, k)),
                pl.BlockSpec((B, MT, V_TILE), lambda k: (0, 0, k)),
            ],
            out_specs=pl.BlockSpec((B, TOTAL_LEN, 1), lambda k: (0, 0, 0)),
            scratch_shapes=[
                pltpu.VMEM((B, MT, V_TILE), jnp.float32),
                pltpu.VMEM((B, MT, V_TILE), jnp.int32),
            ]),
        compiler_params=pltpu.CompilerParams(
            dimension_semantics=("arbitrary",),
            vmem_limit_bytes=VMEM_LIMIT),
    )(token_ids, normu, gumbel)

    # Phase 2: row-tiled emission; consumes only the tiny target table (normu/gumbel
    # are NOT re-streamed).  Both axes parallel -> shards across v7x's 2 TensorCores.
    out = pl.pallas_call(
        _emit_onehot_kernel,
        out_shape=jax.ShapeDtypeStruct((B, TOTAL_LEN, V), jnp.float32),
        grid_spec=pltpu.PrefetchScalarGridSpec(
            num_scalar_prefetch=0,
            grid=(B, n_rtiles),
            in_specs=[pl.BlockSpec((1, ROW_TILE, 1), lambda b, r: (b, r, 0))],
            out_specs=pl.BlockSpec((1, ROW_TILE, V), lambda b, r: (b, r, 0)),
        ),
        compiler_params=pltpu.CompilerParams(
            dimension_semantics=("parallel", "parallel"),
            vmem_limit_bytes=VMEM_LIMIT),
    )(target_tbl)
    return out


def build_token_ids():
    """Fixed token id per sequence row; -1 marks the learned (gumbel) rows."""
    ids = [START_TOK] + PROMPT + [-1] * MANY_TOKENS + [END_TOK] * PAD_LEN
    assert len(ids) == TOTAL_LEN
    return jnp.asarray(ids, jnp.int32).reshape(1, TOTAL_LEN, 1)


def reference_forward(normu, gumbel):
    """Pure-JAX reference matching the PyTorch module's forward value."""
    hard = jax.nn.one_hot(jnp.argmax(normu + gumbel, axis=-1), VOCAB, dtype=jnp.float32)
    start = jnp.zeros((BATCH_SIZE, 1, VOCAB), jnp.float32).at[:, :, START_TOK].set(1.0)
    prompt_oh = jnp.zeros((BATCH_SIZE, len(PROMPT), VOCAB), jnp.float32)
    for jk, pt in enumerate(PROMPT):
        prompt_oh = prompt_oh.at[:, jk, pt].set(1.0)
    pad = jnp.zeros((BATCH_SIZE, PAD_LEN, VOCAB), jnp.float32).at[:, :, END_TOK].set(1.0)
    return jnp.concatenate([start, prompt_oh, hard, pad], axis=1)


if __name__ == "__main__":
    key = jax.random.PRNGKey(0)
    k_param, k_gumbel = jax.random.split(key)

    # self.normu = Parameter(torch.zeros(B, T, V).normal_())  -> deterministic normal init
    normu = jax.random.normal(k_param, (BATCH_SIZE, MANY_TOKENS, VOCAB), jnp.float32)
    # gumbel noise for F.gumbel_softmax (supplied explicitly for determinism)
    gumbel = jax.random.gumbel(k_gumbel, (BATCH_SIZE, MANY_TOKENS, VOCAB), jnp.float32)

    token_ids = build_token_ids()

    out = pars_forward(token_ids, normu, gumbel)
    out = jax.block_until_ready(out)

    # sanity checks: shape, one-hot rows, and full match against the JAX reference
    assert out.shape == (BATCH_SIZE, TOTAL_LEN, VOCAB), out.shape
    row_sums = jnp.sum(out, axis=-1)
    assert bool(jnp.allclose(row_sums, 1.0, atol=1e-5)), "rows must sum to 1"
    ref = reference_forward(normu, gumbel)
    assert bool(jnp.allclose(out, ref, atol=0.0)), "kernel output mismatch vs reference"

    print("KERNEL_OK")
</pallas_src>

<mosaic_0001>
module attributes {stable_mosaic.version = 11 : i64} {
  func.func @_argmax_target_kernel(%arg0: i32, %arg1: memref<1x16x1xi32, #tpu.memory_space<vmem>>, %arg2: memref<2x3x256xf32, #tpu.memory_space<vmem>>, %arg3: memref<2x3x256xf32, #tpu.memory_space<vmem>>, %arg4: memref<2x16x1xi32, #tpu.memory_space<vmem>>, %arg5: memref<2x3x256xf32, #tpu.memory_space<vmem>>, %arg6: memref<2x3x256xi32, #tpu.memory_space<vmem>>) attributes {dimension_semantics = [#tpu.dimension_semantics<arbitrary>], iteration_bounds = array<i64: 2>, scalar_prefetch = 0 : i64, scratch_operands = 2 : i64, tpu.core_type = #tpu.core_type<tc>, window_params = [{pipeline_mode = #tpu.pipeline_mode<synchronous>, transform_indices = @transform_0, window_bounds = array<i64: 1, 16, 1>}, {transform_indices = @transform_1, window_bounds = array<i64: 2, 3, 256>}, {transform_indices = @transform_2, window_bounds = array<i64: 2, 3, 256>}, {pipeline_mode = #tpu.pipeline_mode<synchronous>, transform_indices = @transform_3, window_bounds = array<i64: 2, 16, 1>}]} {
    %c0 = arith.constant 0 : index
    %c0_0 = arith.constant 0 : index
    %c0_1 = arith.constant 0 : index
    %0 = vector.load %arg2[%c0, %c0_0, %c0_1] : memref<2x3x256xf32, #tpu.memory_space<vmem>>, vector<2x3x256xf32>
    %c0_2 = arith.constant 0 : index
    %c0_3 = arith.constant 0 : index
    %c0_4 = arith.constant 0 : index
    %1 = vector.load %arg3[%c0_2, %c0_3, %c0_4] : memref<2x3x256xf32, #tpu.memory_space<vmem>>, vector<2x3x256xf32>
    %2 = arith.addf %0, %1 : vector<2x3x256xf32>
    %3 = tpu.iota {dimensions = array<i32: 2>} : vector<1x1x256xi32>
    %c256_i32 = arith.constant 256 : i32
    %4 = arith.muli %arg0, %c256_i32 : i32
    %5 = vector.broadcast %4 : i32 to vector<1x1x256xi32>
    %6 = arith.addi %3, %5 : vector<1x1x256xi32>
    %c0_i32 = arith.constant 0 : i32
    %7 = arith.cmpi eq, %arg0, %c0_i32 : i32
    %8 = arith.extui %7 : i1 to i32
    %c0_i32_5 = arith.constant 0 : i32
    %9 = arith.cmpi ne, %8, %c0_i32_5 : i32
    scf.if %9 {
      %cst = arith.constant 0xFF800000 : f32
      %23 = vector.broadcast %cst : f32 to vector<2x3x256xf32>
      %c0_22 = arith.constant 0 : index
      %c0_23 = arith.constant 0 : index
      %c0_24 = arith.constant 0 : index
      %24 = vector.load %arg5[%c0_22, %c0_23, %c0_24] : memref<2x3x256xf32, #tpu.memory_space<vmem>>, vector<2x3x256xf32>
      tpu.vector_store %arg5[%c0_22, %c0_23, %c0_24], %23 {strides = array<i32>} : memref<2x3x256xf32, #tpu.memory_space<vmem>>, vector<2x3x256xf32>,
      %c0_i32_25 = arith.constant 0 : i32
      %25 = vector.broadcast %c0_i32_25 : i32 to vector<2x3x256xi32>
      %c0_26 = arith.constant 0 : index
      %c0_27 = arith.constant 0 : index
      %c0_28 = arith.constant 0 : index
      %26 = vector.load %arg6[%c0_26, %c0_27, %c0_28] : memref<2x3x256xi32, #tpu.memory_space<vmem>>, vector<2x3x256xi32>
      tpu.vector_store %arg6[%c0_26, %c0_27, %c0_28], %25 {strides = array<i32>} : memref<2x3x256xi32, #tpu.memory_space<vmem>>, vector<2x3x256xi32>,
    } else {
    }
    %c0_6 = arith.constant 0 : index
    %c0_7 = arith.constant 0 : index
    %c0_8 = arith.constant 0 : index
    %10 = vector.load %arg5[%c0_6, %c0_7, %c0_8] : memref<2x3x256xf32, #tpu.memory_space<vmem>>, vector<2x3x256xf32>
    %11 = arith.cmpf ogt, %2, %10 : vector<2x3x256xf32>
    %c0_9 = arith.constant 0 : index
    %c0_10 = arith.constant 0 : index
    %c0_11 = arith.constant 0 : index
    %12 = vector.load %arg5[%c0_9, %c0_10, %c0_11] : memref<2x3x256xf32, #tpu.memory_space<vmem>>, vector<2x3x256xf32>
    %13 = arith.select %11, %2, %12 : vector<2x3x256xi1>, vector<2x3x256xf32>
    %c0_12 = arith.constant 0 : index
    %c0_13 = arith.constant 0 : index
    %c0_14 = arith.constant 0 : index
    %14 = vector.load %arg5[%c0_12, %c0_13, %c0_14] : memref<2x3x256xf32, #tpu.memory_space<vmem>>, vector<2x3x256xf32>
    tpu.vector_store %arg5[%c0_12, %c0_13, %c0_14], %13 {strides = array<i32>} : memref<2x3x256xf32, #tpu.memory_space<vmem>>, vector<2x3x256xf32>,
    %c0_15 = arith.constant 0 : index
    %c0_16 = arith.constant 0 : index
    %c0_17 = arith.constant 0 : index
    %15 = vector.load %arg6[%c0_15, %c0_16, %c0_17] : memref<2x3x256xi32, #tpu.memory_space<vmem>>, vector<2x3x256xi32>
    %16 = vector.shape_cast %6 : vector<1x1x256xi32> to vector<1x1x256xi32>
    %17 = vector.broadcast %16 : vector<1x1x256xi32> to vector<2x3x256xi32>
    %18 = arith.select %11, %17, %15 : vector<2x3x256xi1>, vector<2x3x256xi32>
    %c0_18 = arith.constant 0 : index
    %c0_19 = arith.constant 0 : index
    %c0_20 = arith.constant 0 : index
    %19 = vector.load %arg6[%c0_18, %c0_19, %c0_20] : memref<2x3x256xi32, #tpu.memory_space<vmem>>, vector<2x3x256xi32>
    tpu.vector_store %arg6[%c0_18, %c0_19, %c0_20], %18 {strides = array<i32>} : memref<2x3x256xi32, #tpu.memory_space<vmem>>, vector<2x3x256xi32>,
    %c1_i32 = arith.constant 1 : i32
    %20 = arith.cmpi eq, %arg0, %c1_i32 : i32
    %21 = arith.extui %20 : i1 to i32
    %c0_i32_21 = arith.constant 0 : i32
    %22 = arith.cmpi ne, %21, %c0_i32_21 : i32
    scf.if %22 {
      %c0_22 = arith.constant 0 : index
      %c0_23 = arith.constant 0 : index
      %c0_24 = arith.constant 0 : index
      %23 = vector.load %arg5[%c0_22, %c0_23, %c0_24] : memref<2x3x256xf32, #tpu.memory_space<vmem>>, vector<2x3x256xf32>
      %cst = arith.constant dense<0xFF800000> : vector<2x3xf32>
      %24 = vector.multi_reduction <maximumf>, %23, %cst [2] : vector<2x3x256xf32> to vector<2x3xf32>
      %25 = vector.shape_cast %24 : vector<2x3xf32> to vector<2x3x1xf32>
      %26 = vector.broadcast %25 : vector<2x3x1xf32> to vector<2x3x256xf32>
      %27 = arith.cmpf oeq, %23, %26 : vector<2x3x256xf32>
      %c0_25 = arith.constant 0 : index
      %c0_26 = arith.constant 0 : index
      %c0_27 = arith.constant 0 : index
      %28 = vector.load %arg6[%c0_25, %c0_26, %c0_27] : memref<2x3x256xi32, #tpu.memory_space<vmem>>, vector<2x3x256xi32>
      %c512_i32 = arith.constant 512 : i32
      %29 = vector.broadcast %c512_i32 : i32 to vector<2x3x256xi32>
      %30 = arith.select %27, %28, %29 : vector<2x3x256xi1>, vector<2x3x256xi32>
      %cst_28 = arith.constant dense<2147483647> : vector<2x3xi32>
      %31 = vector.multi_reduction <minsi>, %30, %cst_28 [2] : vector<2x3x256xi32> to vector<2x3xi32>
      %32 = vector.shape_cast %31 : vector<2x3xi32> to vector<2x3x1xi32>
      %c0_29 = arith.constant 0 : index
      %c0_30 = arith.constant 0 : index
      %c0_31 = arith.constant 0 : index
      %33 = vector.load %arg1[%c0_29, %c0_30, %c0_31] : memref<1x16x1xi32, #tpu.memory_space<vmem>>, vector<1x16x1xi32>
      %34 = vector.shape_cast %33 : vector<1x16x1xi32> to vector<1x16x1xi32>
      %35 = vector.broadcast %34 : vector<1x16x1xi32> to vector<2x16x1xi32>
      %36 = tpu.iota {dimensions = array<i32: 1>} : vector<1x16x1xi32>
      %c3_i32 = arith.constant 3 : i32
      %37 = vector.broadcast %c3_i32 : i32 to vector<1x16x1xi32>
      %38 = arith.cmpi eq, %36, %37 : vector<1x16x1xi32>
      %39 = vector.extract_strided_slice %32 {offsets = [0, 0, 0], sizes = [2, 1, 1], strides = [1, 1, 1]} : vector<2x3x1xi32> to vector<2x1x1xi32>
      %40 = vector.shape_cast %38 : vector<1x16x1xi1> to vector<1x16x1xi1>
      %41 = vector.broadcast %40 : vector<1x16x1xi1> to vector<2x16x1xi1>
      %42 = vector.shape_cast %39 : vector<2x1x1xi32> to vector<2x1x1xi32>
      %43 = vector.broadcast %42 : vector<2x1x1xi32> to vector<2x16x1xi32>
      %44 = arith.select %41, %43, %35 : vector<2x16x1xi1>, vector<2x16x1xi32>
      %c4_i32 = arith.constant 4 : i32
      %45 = vector.broadcast %c4_i32 : i32 to vector<1x16x1xi32>
      %46 = arith.cmpi eq, %36, %45 : vector<1x16x1xi32>
      %47 = vector.extract_strided_slice %32 {offsets = [0, 1, 0], sizes = [2, 1, 1], strides = [1, 1, 1]} : vector<2x3x1xi32> to vector<2x1x1xi32>
      %48 = vector.shape_cast %46 : vector<1x16x1xi1> to vector<1x16x1xi1>
      %49 = vector.broadcast %48 : vector<1x16x1xi1> to vector<2x16x1xi1>
      %50 = vector.shape_cast %47 : vector<2x1x1xi32> to vector<2x1x1xi32>
      %51 = vector.broadcast %50 : vector<2x1x1xi32> to vector<2x16x1xi32>
      %52 = arith.select %49, %51, %44 : vector<2x16x1xi1>, vector<2x16x1xi32>
      %c5_i32 = arith.constant 5 : i32
      %53 = vector.broadcast %c5_i32 : i32 to vector<1x16x1xi32>
      %54 = arith.cmpi eq, %36, %53 : vector<1x16x1xi32>
      %55 = vector.extract_strided_slice %32 {offsets = [0, 2, 0], sizes = [2, 1, 1], strides = [1, 1, 1]} : vector<2x3x1xi32> to vector<2x1x1xi32>
      %56 = vector.shape_cast %54 : vector<1x16x1xi1> to vector<1x16x1xi1>
      %57 = vector.broadcast %56 : vector<1x16x1xi1> to vector<2x16x1xi1>
      %58 = vector.shape_cast %55 : vector<2x1x1xi32> to vector<2x1x1xi32>
      %59 = vector.broadcast %58 : vector<2x1x1xi32> to vector<2x16x1xi32>
      %60 = arith.select %57, %59, %52 : vector<2x16x1xi1>, vector<2x16x1xi32>
      %c0_32 = arith.constant 0 : index
      %c0_33 = arith.constant 0 : index
      %c0_34 = arith.constant 0 : index
      %61 = vector.load %arg4[%c0_32, %c0_33, %c0_34] : memref<2x16x1xi32, #tpu.memory_space<vmem>>, vector<2x16x1xi32>
      tpu.vector_store %arg4[%c0_32, %c0_33, %c0_34], %60 {strides = array<i32>} : memref<2x16x1xi32, #tpu.memory_space<vmem>>, vector<2x16x1xi32>,
    } else {
    }
    return
  }
  func.func @transform_0(%arg0: i32) -> (i32, i32, i32) {
    %c0_i32 = arith.constant 0 : i32
    %c0_i32_0 = arith.constant 0 : i32
    %c0_i32_1 = arith.constant 0 : i32
    %c0_i32_2 = arith.constant 0 : i32
    return %c0_i32, %c0_i32_0, %c0_i32_1 : i32, i32, i32
  }
  func.func @transform_1(%arg0: i32) -> (i32, i32, i32) {
    %c0_i32 = arith.constant 0 : i32
    %c0_i32_0 = arith.constant 0 : i32
    %c0_i32_1 = arith.constant 0 : i32
    return %c0_i32, %c0_i32_0, %arg0 : i32, i32, i32
  }
  func.func @transform_2(%arg0: i32) -> (i32, i32, i32) {
    %c0_i32 = arith.constant 0 : i32
    %c0_i32_0 = arith.constant 0 : i32
    %c0_i32_1 = arith.constant 0 : i32
    return %c0_i32, %c0_i32_0, %arg0 : i32, i32, i32
  }
  func.func @transform_3(%arg0: i32) -> (i32, i32, i32) {
    %c0_i32 = arith.constant 0 : i32
    %c0_i32_0 = arith.constant 0 : i32
    %c0_i32_1 = arith.constant 0 : i32
    %c0_i32_2 = arith.constant 0 : i32
    return %c0_i32, %c0_i32_0, %c0_i32_1 : i32, i32, i32
  }
}

module attributes {stable_mosaic.version = 11 : i64} {
  func.func @_emit_onehot_kernel(%arg0: i32, %arg1: i32, %arg2: memref<1x8x1xi32, #tpu.memory_space<vmem>>, %arg3: memref<1x8x512xf32, #tpu.memory_space<vmem>>) attributes {dimension_semantics = [#tpu.dimension_semantics<parallel>, #tpu.dimension_semantics<parallel>], iteration_bounds = array<i64: 2, 2>, scalar_prefetch = 0 : i64, scratch_operands = 0 : i64, tpu.core_type = #tpu.core_type<tc>, window_params = [{transform_indices = @transform_0, window_bounds = array<i64: 1, 8, 1>}, {transform_indices = @transform_1, window_bounds = array<i64: 1, 8, 512>}]} {
    %0 = tpu.iota {dimensions = array<i32: 2>} : vector<1x1x512xi32>
    %c0 = arith.constant 0 : index
    %c0_0 = arith.constant 0 : index
    %c0_1 = arith.constant 0 : index
    %1 = vector.load %arg2[%c0, %c0_0, %c0_1] : memref<1x8x1xi32, #tpu.memory_space<vmem>>, vector<1x8x1xi32>
    %2 = vector.broadcast %0 : vector<1x1x512xi32> to vector<1x8x512xi32>
    %3 = vector.broadcast %1 : vector<1x8x1xi32> to vector<1x8x512xi32>
    %4 = arith.cmpi eq, %2, %3 : vector<1x8x512xi32>
    %5 = arith.extui %4 : vector<1x8x512xi1> to vector<1x8x512xi32>
    %6 = arith.sitofp %5 : vector<1x8x512xi32> to vector<1x8x512xf32>
    %c0_2 = arith.constant 0 : index
    %c0_3 = arith.constant 0 : index
    %c0_4 = arith.constant 0 : index
    %7 = vector.load %arg3[%c0_2, %c0_3, %c0_4] : memref<1x8x512xf32, #tpu.memory_space<vmem>>, vector<1x8x512xf32>
    tpu.vector_store %arg3[%c0_2, %c0_3, %c0_4], %6 {strides = array<i32>} : memref<1x8x512xf32, #tpu.memory_space<vmem>>, vector<1x8x512xf32>,
    return
  }
  func.func @transform_0(%arg0: i32, %arg1: i32) -> (i32, i32, i32) {
    %c0_i32 = arith.constant 0 : i32
    %c0_i32_0 = arith.constant 0 : i32
    return %arg0, %arg1, %c0_i32 : i32, i32, i32
  }
  func.func @transform_1(%arg0: i32, %arg1: i32) -> (i32, i32, i32) {
    %c0_i32 = arith.constant 0 : i32
    %c0_i32_0 = arith.constant 0 : i32
    return %arg0, %arg1, %c0_i32 : i32, i32, i32
  }
}

</mosaic_0001>

<bundles_post_ra>
// kernel: pars_forward.3
= control target key start
LH: loop header
LB: loop body
LE: loop exit
PB: predicated region body
PF: predicated region fallthrough
CT: control target
= control target key end

     0   :  { %6 = vsyncpa [#allocation3], 0  ;;  %s596_s0 = inlined_call_operand.vmem [shape: s32[2,16,1], index: 0, kind: input, shape index: {}]   ;;  %s597_s1 = inlined_call_operand.hbm [shape: f32[2,16,512], index: 1, kind: output, shape index: {}]  }
   0x1   :  { %8 = vsyncpa [#allocation3 + $0x1], 0  ;;  %s460_s6 = smov 0   ;;  %s462_s7 = smov 0  }
   0x2   :  { %s464_s8 = smov 0   ;;  %s466_s9 = smov 0  }
   0x3   :  { %s468_s10 = smov 0   ;;  %s470_s11 = smov 0  }
   0x4   :  { %s472_s12 = smov 0   ;;  %s474_s13 = smov 0  }
   0x5 LB: > { %s261_s14 = sadd.s32 4294967295, %s445_s13   ;;  %s262_s15 = sadd.s32 4294967294, %s445_s13   ;;  %s445_s13 = sphi %s474_s13, %s14_s13   ;;  %s441_s12 = sphi %s472_s12, %s606_s12   ;;  %s437_s11 = sphi %s470_s11, %s605_s11   ;;  %s433_s10 = sphi %s468_s10, %s604_s10   ;;  %s429_s9 = sphi %s466_s9, %s603_s9   ;;  %s425_s8 = sphi %s464_s8, %s602_s8   ;;  %s421_s7 = sphi %s462_s7, %s601_s7   ;;  %s417_s6 = sphi %s460_s6, %s600_s6  }
   0x6   : > { %s23_s16 = sadd.s32 1, %s437_s11  ;;  %s26_s17 = sadd.s32 1, %s441_s12 }
   0x7   : > { %p24_p0 = scmp.ge.s32.totalorder %s23_s16, 2  ;;  %p73_p1 = scmp.ne.s32.totalorder %s425_s8, %s421_s7 }
   0x8   : > { %p74_p2 = scmp.eq.s32.totalorder %s261_s14, 3  ;;  %p79_p5 = scmp.ne.s32.totalorder %s421_s7, %s417_s6 }
   0x9   : > { %s608_s16 = smov (%p24_p0, %s23_s16), 0  ;;  %s610_s17 = smov (!%p24_p0, %s26_s17), %s441_s12 }
   0xa   : > { %s59_s18 = ssub.s32 %s437_s11, %s608_s16  ;;  %p511_p3 = por %p74_p2, %p73_p1 }
   0xb   : > { %p28_p4 = scmp.ge.s32.totalorder %s610_s17, 2  ;;  %p80_p6 = scmp.eq.s32.totalorder %s262_s15, 3 }
   0xc   : > { %p265_p7 = scmp.ge.s32.totalorder %s445_s13, 1  ;;  %p109_p9 = scmp.lt.s32.totalorder %s445_s13, 5 }
   0xd   : > { %s612_s17 = smov (%p28_p4, %s610_s17), 0  ;;  %p520_p8 = por %p80_p6, %p79_p5 }
   0xe   : > { %s58_s21 = ssub.s32 %s441_s12, %s612_s17  ;;  %s63_s22 = sadd.s32 1, %s425_s8 }
   0xf   : > { %s60_s23 = sor.u32 %s59_s18, %s58_s21  ;;  %p110_p10 = pnand %p265_p7, %p109_p9 }
  0x10   : > { %p61_p11 = scmp.eq.s32.totalorder %s60_s23, 0  ;;  %p132_p12 = scmp.lt.s32.totalorder (!%p110_p10), %s433_s10, 1 }
  0x11   : > { %113 = sbr.rel (%p110_p10) target bundleno = 169 (0xa9), region = 24  ;;  %p134_p13 = scmp.lt.s32.totalorder (!%p110_p10), %s429_s9, 1 }
  0x12   : > { %s529_s24 = scalar_select %p61_p11, %s425_s8, %s63_s22  }
  0x13   : > { %s129_s4 = sand.u32 (!%p110_p10), 1, %s421_s7   ;;  %s274_s14 = sshll.u32 (!%p110_p10), %s429_s9, 2 }
  0x14   : > { %s266_s5 = sshll.u32 (!%p110_p10), %s129_s4, 5  ;;  %s275_s15 = sshll.u32 (!%p110_p10), %s433_s10, 3 }
  0x15   : > { %s178_s18 = sadd.s32 (!%p110_p10), %s275_s15, %s274_s14  ;;  %s131_s22 = scalar_lea.vmem (!%p110_p10), [#allocation2], %s266_s5 }
  0x16   : > { %v447_v0 = vmov 0   ;;  %s133_s25 = scalar_select %p132_p12, %s433_s10, 1  ;;  %v140_v2 = vlaneseq  ;;  %v448_v8 = vmov 0.0  }
  0x17   : > { %352 = vset.pattern.permute.xlu0 %v447_v0  ;;  %s135_s26 = scalar_select %p134_p13, %s429_s9, 1 }
  0x18   : > { %s267_s27 = sshll.u32 %s133_s25, 1  ;;  %v141_v3 = vand.u32 127, %v140_v2  ;;  %s276_s21 = sshll.u32 %s178_s18, 7 }
  0x19   : > { %s137_s28 = sadd.s32 %s267_s27, %s135_s26  ;;  %s182_s23 = sshll.u32 %s131_s22, 4  ;;  %s546_s23 = int_to_ptr.vmem [resolvable:$true] %s182_s23 }
  0x1a   : > { %s268_s29 = sshll.u32 %s137_s28, 3  ;;  %v142_v4 = vadd.s32 128, %v141_v3  ;;  %v143_v5 = vadd.s32 256, %v141_v3  ;;  %v144_v6 = vadd.s32 384, %v141_v3  ;;  %s544_s27 = scalar_lea.hbm %s597_s1, %s276_s21 }
  0x1b   : > { %s139_s3 = scalar_lea.vmem %s596_s0, %s268_s29  ;;  %s166_s9 = scalar_lea.sflag [#allocation3], %s129_s4 }
  0x1c   : > { %v145_v1 = vld [vmem:[%s139_s3] sm:$0xff]  ;;  %s353_s10 = scalar_lea.vmem %s546_s23, 512  ;;  %s449_s28 = smov [#allocation2]  }
  0x1d   : > { %147 = vperm.xlu0 %352, %v145_v1   ;;  %p354_p0 = scmp.ne.s32.totalorder %s546_s23, %s353_s10  ;;  %s357_s29 = sshll.u32 %s449_s28, 4  ;;  %s358_s29 = int_to_ptr.vmem [resolvable:$false] %s357_s29 }
  0x1e   : > { %s359_s30 = scalar_lea.vmem %s358_s29, 1024  ;;  %p360_p4 = scmp.lt.s32.totalorder %s546_s23, %s358_s29 }
  0x1f   : > { %p355_p1 = pnand %p354_p0, %p511_p3  ;;  %p361_p5 = scmp.lt.s32.totalorder %s359_s30, %s353_s10 }
  0x21   : > { %p356_p2 = pneg %p355_p1  ;;  %p362_p6 = por %p361_p5, %p360_p4 }
  0x23   : > { %p363_p7 = pnand %p362_p6, %p356_p2 }
  0x98   : > { %v148_v7 = vpop.permute.xlu0 %147 }
  0x99   : > { %vm149_vm0 = vcmp.eq.s32.totalorder %v141_v3, %v148_v7  ;;  %vm150_vm1 = vcmp.eq.s32.totalorder %v142_v4, %v148_v7  ;;  %vm151_vm2 = vcmp.eq.s32.totalorder %v143_v5, %v148_v7  ;;  %vm152_vm3 = vcmp.eq.s32.totalorder %v144_v6, %v148_v7 }
  0x9a   : > { %v269_v9 = vsel %vm149_vm0, 1.0, %v448_v8  ;;  %v270_v10 = vsel %vm150_vm1, 1.0, %v448_v8  ;;  %v271_v11 = vsel %vm151_vm2, 1.0, %v448_v8  ;;  %v272_v12 = vsel %vm152_vm3, 1.0, %v448_v8 }
  0x9b   : > { %161 = vst [vmem:[%s131_s22] sm:$0xff] %v269_v9  ;;  %162 = vst [vmem:[%s131_s22 + $0x8] sm:$0xff] %v270_v10 }
  0x9c   : > { %163 = vst [vmem:[%s131_s22 + $0x10] sm:$0xff] %v271_v11  ;;  %164 = vst [vmem:[%s131_s22 + $0x18] sm:$0xff] %v272_v12 }
  0x9d   : > { %366 = shalt.err (!%p363_p7)
}
  0x9e   : > { %s367_s2 = scalar_lea.hbm %s544_s27, 512  ;;  %s371_s5 = scalar_lea.hbm %s597_s1, 2048 }
  0x9f   : > { %p368_p9 = scmp.ne.s32.totalorder %s544_s27, %s367_s2  ;;  %p372_p12 = scmp.lt.s32.totalorder %s544_s27, %s597_s1 }
  0xa0   : > { %p373_p13 = scmp.lt.s32.totalorder %s371_s5, %s367_s2 }
  0xa1   : > { %p369_p10 = pnand %p368_p9, %p511_p3 }
  0xa2   : > { %p374_p0 = por %p373_p13, %p372_p12 }
  0xa3   : > { %p370_p11 = pneg %p369_p10 }
  0xa5   : > { %p375_p1 = pnand %p374_p0, %p370_p11 }
  0xa7   : > { %378 = shalt.err (!%p375_p1)
}
  0xa8   : > { %279 = dma.vmem_to_hbm [thread:$0]  (%p511_p3), %s546_s23, 512, %s544_s27, %s166_s9  }
  0xa9 PF: > { %p285_p2 = scmp.ge.s32.totalorder %s445_s13, 2  ;;  %s194_s18 = sand.u32 1, %s417_s6  }
  0xaa   : > { %s195_s21 = scalar_lea.sflag [#allocation3], %s194_s18 }
  0xab   : > { %p282_p4 = pnand %p285_p2, %p520_p8 }
  0xad   : > { %p283_p5 = pneg %p282_p4 }
  0xaf   : > { %412 = dma.done.wait (%p283_p5), %s195_s21, 512  }
  0xb0   : > { %414 = vsyncadd (%p283_p5), %s195_s21, 4294966784  ;;  %s14_s13 = sadd.s32 1, %s445_s13   ;;  %s600_s6 = smov %s421_s7 }
  0xb1   : > { %p11_p6 = scmp.ge.s32.totalorder %s14_s13, 6   ;;  %s601_s7 = smov %s425_s8 }
  0xb2   : > { %s602_s8 = smov %s529_s24  ;;  %s603_s9 = smov %s437_s11 }
  0xb3   : > { %s604_s10 = smov %s441_s12  ;;  %s605_s11 = smov %s608_s16 }
  0xb4   : > { %s606_s12 = smov %s612_s17  ;;  %13 = sbr.rel (!%p11_p6) target bundleno = 5 (0x5), region = 59 }
  0xb9   :  { %200 = vsyncpa [#allocation3], 1 }
  0xba   :  { %202 = vsyncpa [#allocation3 + $0x1], 1 }

// kernel: pars_forward.2
= control target key start
LH: loop header
LB: loop body
LE: loop exit
PB: predicated region body
PF: predicated region fallthrough
CT: control target
= control target key end

     0   :  { %s590_s12 = smov 0   ;;  %s592_s13 = smov 0   ;;  %s702_s0 = inlined_call_operand.vmem [shape: s32[1,16,1], index: 0, kind: input, shape index: {}]   ;;  %s703_s1 = inlined_call_operand.vmem [shape: f32[2,3,512], index: 1, kind: input, shape index: {}]   ;;  %s704_s2 = inlined_call_operand.vmem [shape: f32[2,3,512], index: 2, kind: input, shape index: {}]   ;;  %s705_s3 = inlined_call_operand.vmem [shape: s32[2,16,1], index: 3, kind: output, shape index: {}]  }
   0x1   :  { %s594_s14 = smov 0  }
   0x2 LB: > { %s606_s15 = sadd.s32 4294967295, %s565_s14   ;;  %s609_s16 = sadd.s32 1, %s565_s14   ;;  %s565_s14 = sphi %s594_s14, %s709_s14   ;;  %s561_s13 = sphi %s592_s13, %s708_s13   ;;  %s557_s12 = sphi %s590_s12, %s707_s12  }
   0x3   : > { %s38_s17 = ssub.s32 %s565_s14, %s609_s16  ;;  %s41_s18 = sadd.s32 1, %s561_s13 }
   0x4   : > { %p39_p0 = scmp.eq.s32.totalorder %s38_s17, 0  ;;  %p48_p1 = scmp.ne.s32.totalorder %s561_s13, %s557_s12 }
   0x5   : > { %p49_p2 = scmp.eq.s32.totalorder %s565_s14, 0  ;;  %p497_p4 = scmp.ge.s32.totalorder %s565_s14, 2 }
   0x6   : > { %s618_s19 = scalar_select %p39_p0, %s561_s13, %s41_s18  }
   0x7   : > { %p620_p3 = por %p49_p2, %p48_p1  ;;  %124 = sbr.rel (%p497_p4) target bundleno = 22 (0x16), region = 20 }
   0xc   : > { %127 = sbr.rel (!%p620_p3) target bundleno = 17 (0x11), region = 24  ;;  %s129_s21 = sand.u32 (%p620_p3), 1, %s561_s13  }
   0xd   : > { %s512_s22 = sshll.u32 (%p620_p3), %s565_s14, 3  ;;  %s498_s23 = sshll.u32 (%p620_p3), %s129_s21, 4 }
   0xe   : > { %s134_s26 = scalar_lea.vmem (%p620_p3), %s703_s1, %s512_s22  ;;  %s131_s27 = scalar_lea.vmem (%p620_p3), [#allocation4], %s498_s23 }
   0xf   : > { %v165_v0 = vld [vmem:[%s134_s26] sm:$0xff] (%p620_p3)  ;;  %v167_v1 = vld [vmem:[%s134_s26 + $0x10] sm:$0xff] (%p620_p3) }
  0x10   : > { %166 = vst [vmem:[%s131_s27] sm:$0xff] (%p620_p3), %v165_v0  ;;  %168 = vst [vmem:[%s131_s27 + $0x8] sm:$0xff] (%p620_p3), %v167_v1 }
  0x11 PF: > { %174 = sbr.rel (!%p620_p3) target bundleno = 22 (0x16), region = 62  ;;  %s176_s28 = sand.u32 (%p620_p3), 1, %s561_s13  }
  0x12   : > { %s513_s29 = sshll.u32 (%p620_p3), %s565_s14, 3  ;;  %s501_s30 = sshll.u32 (%p620_p3), %s176_s28, 4 }
  0x13   : > { %s181_s6 = scalar_lea.vmem (%p620_p3), %s704_s2, %s513_s29  ;;  %s178_s7 = scalar_lea.vmem (%p620_p3), [#allocation5], %s501_s30 }
  0x14   : > { %v212_v2 = vld [vmem:[%s181_s6] sm:$0xff] (%p620_p3)  ;;  %v214_v3 = vld [vmem:[%s181_s6 + $0x10] sm:$0xff] (%p620_p3) }
  0x15   : > { %213 = vst [vmem:[%s178_s7] sm:$0xff] (%p620_p3), %v212_v2  ;;  %215 = vst [vmem:[%s178_s7 + $0x8] sm:$0xff] (%p620_p3), %v214_v3 }
  0x16 PF: > { %p504_p5 = scmp.ge.s32.totalorder %s565_s14, 1  ;;  %p220_p6 = scmp.lt.s32.totalorder %s565_s14, 3 }
  0x18   : > { %p221_p7 = pnand %p504_p5, %p220_p6 }
  0x19   : > { %s227_s8 = sand.u32 (!%p221_p7), 1, %s557_s12   ;;  %s507_s9 = sshll.u32 (!%p221_p7), %s606_s15, 8 }
  0x1a   : > { %224 = sbr.rel (%p221_p7) target bundleno = 505 (0x1f9), region = 100  ;;  %s505_s10 = sshll.u32 (!%p221_p7), %s227_s8, 4 }
  0x1b   : > { %s229_s11 = scalar_lea.vmem (!%p221_p7), [#allocation4], %s505_s10  ;;  %s236_s17 = scalar_lea.vmem (!%p221_p7), [#allocation5], %s505_s10 }
  0x1c   : > { %p508_p8 = scmp.ne.s32.totalorder (!%p221_p7), %s606_s15, 0 }
  0x1f   : > { %v264_v4 = vlaneseq  ;;  %v268_v5 = vstv %s507_s9  ;;  %v258_v7 = vld [vmem:[%s229_s11] sm:$0x77]  ;;  %v259_v8 = vld [vmem:[%s229_s11 + $0x8] sm:$0x77] }
  0x20   : > { %v260_v9 = vld [vmem:[%s236_s17] sm:$0x77]  ;;  %v261_v10 = vld [vmem:[%s236_s17 + $0x8] sm:$0x77] }
  0x21   : > { %v265_v6 = vand.u32 127, %v264_v4  ;;  %v262_v11 = vadd.f32 %v260_v9, %v258_v7  ;;  %v263_v14 = vadd.f32 %v261_v10, %v259_v8  ;;  %274 = sbr.rel (%p508_p8) target bundleno = 41 (0x29), region = 112 }
  0x23   : > { %v266_v12 = vadd.s32 128, %v265_v6  ;;  %v269_v13 = vadd.s32 %v268_v5, %v265_v6 }
  0x25   : > { %v270_v15 = vadd.s32 %v268_v5, %v266_v12 }
  0x26   : > { %v567_v16 = vmov -inf   ;;  %v568_v17 = vmov 0  }
  0x27   : > { %275 = vst [vmem:[#allocation2] sm:$0x77] %v567_v16  ;;  %276 = vst [vmem:[#allocation2 + $0x8] sm:$0x77] %v567_v16 }
  0x28   : > { %277 = vst [vmem:[#allocation3 + $0x8] sm:$0x77] %v568_v17  ;;  %278 = vst [vmem:[#allocation3] sm:$0x77] %v568_v17 }
  0x29 PF: > { %v289_v21 = vcombine.low %v269_v13, %v270_v15  ;;  %p509_p9 = scmp.ne.s32.totalorder %s606_s15, 1 }
  0x2e   : > { %v279_v18 = vld [vmem:[#allocation2] sm:$0x77]  ;;  %v280_v19 = vld [vmem:[#allocation2 + $0x8] sm:$0x77]  ;;  %297 = sbr.rel (%p509_p9) target bundleno = 505 (0x1f9), region = 116 }
  0x2f   : > { %v287_v20 = vld [vmem:[#allocation3 + $0x8] sm:$0x77]  ;;  %vm281_vm0 = vcmp.gt.f32.partialorder %v262_v11, %v279_v18  ;;  %vm282_vm1 = vcmp.gt.f32.partialorder %v263_v14, %v280_v19  ;;  %v288_v22 = vld [vmem:[#allocation3] sm:$0x77] }
  0x30   : > { %v283_v23 = vsel %vm281_vm0, %v262_v11, %v279_v18  ;;  %v284_v24 = vsel %vm282_vm1, %v263_v14, %v280_v19  ;;  %v290_v25 = vsel %vm281_vm0, %v289_v21, %v287_v20  ;;  %v291_v26 = vsel %vm282_vm1, %v289_v21, %v288_v22 }
  0x31   : > { %285 = vst [vmem:[#allocation2] sm:$0x77] %v283_v23  ;;  %286 = vst [vmem:[#allocation2 + $0x8] sm:$0x77] %v284_v24 }
  0x32   : > { %292 = vst [vmem:[#allocation3 + $0x8] sm:$0x77] %v290_v25  ;;  %293 = vst [vmem:[#allocation3] sm:$0x77] %v291_v26 }
  0x33   : > { %vm306_vm2 = vcmask 1042432   ;;  %v569_v37 = vmov 839922192   ;;  %v649_v40 = vshrl.u32 %v264_v4, 7  ;;  %v380_v62 = vld [vmem:[%s702_s0 + $0x8] sm:$0xff]  ;;  %vm438_vm7 = vcmask 7168  }
  0x34   : > { %v320_v38 = vunpack.c.l.s4 %v569_v37  ;;  %440 = vst.msk [vmem:[%s705_s3 + $0x8] sm:$0xff] %vm438_vm7, %v380_v62  ;;  %442 = vst.msk [vmem:[%s705_s3 + $0x18] sm:$0xff] %vm438_vm7, %v380_v62  ;;  %v379_v16 = vld [vmem:[%s702_s0] sm:$0xff] }
  0x35   : > { %v392_v8 = vsub.s32 0, %v649_v40  ;;  %v410_v12 = vsub.s32 1, %v649_v40  ;;  %v428_v14 = vsub.s32 2, %v649_v40  ;;  %vm384_vm10 = vcmp.eq.s32.totalorder %v649_v40, 3 }
  0x36   : > { %v321_v39 = vunpack.c.0.s8 %v320_v38  ;;  %vm402_vm11 = vcmp.eq.s32.totalorder %v649_v40, 4  ;;  %vm420_vm12 = vcmp.eq.s32.totalorder %v649_v40, 5 }
  0x38   : > { %v298_v27 = vld [vmem:[#allocation2] sm:$0x77]  ;;  %v299_v28 = vld [vmem:[#allocation2 + $0x8] sm:$0x77]  ;;  %v324_v41 = vsub.s32 %v321_v39, %v649_v40 }
  0x39   : > { %v302_v29 = vcombine.high %v298_v27, %v298_v27  ;;  %v307_v30 = vsel %vm306_vm2, %v298_v27, -inf  ;;  %v303_v31 = vcombine.high %v299_v28, %v299_v28  ;;  %v312_v33 = vsel %vm306_vm2, %v299_v28, -inf  ;;  %v337_v43 = vld [vmem:[#allocation3 + $0x8] sm:$0x77]  ;;  %v338_v48 = vld [vmem:[#allocation3] sm:$0x77] }
  0x3b   : > { %v308_v32 = vsel %vm306_vm2, %v302_v29, -inf  ;;  %v313_v34 = vsel %vm306_vm2, %v303_v31, -inf }
  0x3c   : > { %v309_v35 = vmax.f32 %v307_v30, %v308_v32  ;;  %v314_v36 = vmax.f32 %v312_v33, %v313_v34 }
  0x3e   : > { %310 = vmax.xlane.f32.xlu0 %v309_v35 }
  0x42   : > { %315 = vmax.xlane.f32.xlu0 %v314_v36 }
  0xc7   : > { %v311_v42 = vpop.xlane.xlu0 %310 }
  0xc8   : > { %v325_v44 = vrot.slane %v311_v42, %v324_v41 }
  0xca   : > { %vm335_vm3 = vcmp.eq.f32.partialorder %v298_v27, %v325_v44 }
  0xcb   : > { %v339_v45 = vsel %vm335_vm3, %v337_v43, 512  ;;  %v316_v46 = vpop.xlane.xlu0 %315 }
  0xcc   : > { %v341_v47 = vcombine.high %v339_v45, %v339_v45  ;;  %v332_v49 = vrot.slane %v316_v46, %v324_v41  ;;  %v343_v50 = vsel %vm306_vm2, %v339_v45, 2147483647 }
  0xce   : > { %vm336_vm4 = vcmp.eq.f32.partialorder %v299_v28, %v332_v49  ;;  %v344_v51 = vsel %vm306_vm2, %v341_v47, 2147483647 }
  0xcf   : > { %v340_v52 = vsel %vm336_vm4, %v338_v48, 512  ;;  %vm345_vm5 = vcmp.lt.s32.totalorder %v343_v50, %v344_v51 }
  0xd0   : > { %v342_v53 = vcombine.high %v340_v52, %v340_v52  ;;  %v346_v54 = vsel %vm345_vm5, %v343_v50, %v344_v51  ;;  %v361_v56 = vsel %vm306_vm2, %v340_v52, 2147483647 }
  0xd1   : > { %v348_v55 = vshra.s32 %v346_v54, 16  ;;  %v347_v63 = vand.u32 65535, %v346_v54 }
  0xd2   : > { %v362_v57 = vsel %vm306_vm2, %v342_v53, 2147483647 }
  0xd3   : > { %v350_v58 = vcvt.s32.f32 %v348_v55  ;;  %vm363_vm6 = vcmp.lt.s32.totalorder %v361_v56, %v362_v57  ;;  %v349_v1 = vcvt.s32.f32 %v347_v63 }
  0xd4   : > { %v364_v59 = vsel %vm363_vm6, %v361_v56, %v362_v57 }
  0xd5   : > { %351 = vmin.xlane.f32.xlu1 %v350_v58  ;;  %v366_v60 = vshra.s32 %v364_v59, 16  ;;  %v365_v2 = vand.u32 65535, %v364_v59 }
  0xd7   : > { %v368_v61 = vcvt.s32.f32 %v366_v60  ;;  %v367_v5 = vcvt.s32.f32 %v365_v2 }
  0xd9   : > { %369 = vmin.xlane.f32.xlu1 %v368_v61 }
 0x15e   : > { %v352_v0 = vpop.xlane.xlu1 %351 }
 0x15f   : > { %vm353_vm8 = vcmp.eq.f32.partialorder %v350_v58, %v352_v0  ;;  %v358_v7 = vcvt.f32.s32 %v352_v0 }
 0x160   : > { %v354_v3 = vsel %vm353_vm8, %v349_v1, inf }
 0x161   : > { %355 = vmin.xlane.f32.xlu0 %v354_v3  ;;  %v359_v10 = vshll.u32 %v358_v7, 16 }
 0x162   : > { %v370_v4 = vpop.xlane.xlu1 %369 }
 0x163   : > { %vm371_vm9 = vcmp.eq.f32.partialorder %v368_v61, %v370_v4  ;;  %v376_v11 = vcvt.f32.s32 %v370_v4 }
 0x164   : > { %v372_v6 = vsel %vm371_vm9, %v367_v5, inf }
 0x165   : > { %373 = vmin.xlane.f32.xlu1 %v372_v6  ;;  %v377_v18 = vshll.u32 %v376_v11, 16 }
 0x1ea   : > { %v356_v9 = vpop.xlane.xlu0 %355 }
 0x1eb   : > { %v357_v13 = vcvt.f32.s32 %v356_v9 }
 0x1ed   : > { %v360_v15 = vadd.s32 %v359_v10, %v357_v13 }
 0x1ee   : > { %v374_v17 = vpop.xlane.xlu1 %373 }
 0x1ef   : > { %v393_v19 = vrot.slane %v360_v15, %v392_v8  ;;  %v411_v20 = vrot.slane %v360_v15, %v410_v12  ;;  %v375_v21 = vcvt.f32.s32 %v374_v17  ;;  %v429_v23 = vrot.slane %v360_v15, %v428_v14 }
 0x1f1   : > { %v398_v22 = vsel %vm384_vm10, %v393_v19, %v379_v16  ;;  %v378_v24 = vadd.s32 %v377_v18, %v375_v21 }
 0x1f2   : > { %v416_v25 = vsel %vm402_vm11, %v411_v20, %v398_v22 }
 0x1f3   : > { %v434_v26 = vsel %vm420_vm12, %v429_v23, %v416_v25  ;;  %v397_v27 = vrot.slane %v378_v24, %v392_v8  ;;  %v415_v28 = vrot.slane %v378_v24, %v410_v12  ;;  %v433_v30 = vrot.slane %v378_v24, %v428_v14 }
 0x1f4   : > { %439 = vst.msk [vmem:[%s705_s3] sm:$0xff] %vm438_vm7, %v434_v26 }
 0x1f5   : > { %v400_v29 = vsel %vm384_vm10, %v397_v27, %v379_v16 }
 0x1f6   : > { %v418_v31 = vsel %vm402_vm11, %v415_v28, %v400_v29 }
 0x1f7   : > { %v436_v32 = vsel %vm420_vm12, %v433_v30, %v418_v31 }
 0x1f8   : > { %441 = vst.msk [vmem:[%s705_s3 + $0x10] sm:$0xff] %vm438_vm7, %v436_v32 }
 0x1f9 PF: > { %p10_p10 = scmp.ge.s32.totalorder %s609_s16, 4   ;;  %s707_s12 = smov %s561_s13 }
 0x1fa   : > { %s708_s13 = smov %s618_s19  ;;  %s709_s14 = smov %s609_s16 }
 0x1fb   :  { %12 = sbr.rel (!%p10_p10) target bundleno = 2 (0x2), region = 155 }

</bundles_post_ra>
